<compile_context>
chip_gen: v5e
topology: v5e:2x2
jax: 0.10.0
libtpu: 0.0.40
codegen_flags: <defaults>
</compile_context>

<pallas_src>
import functools

import jax
import jax.numpy as jnp
from jax.experimental import pallas as pl
from jax.experimental.pallas import tpu as pltpu


def _round_up(x: int, m: int) -> int:
    return ((x + m - 1) // m) * m


def _sublane_unit(dtype) -> int:
    # 8 sublanes for 4-byte, 16 for 2-byte, 32 for 1-byte dtypes (min tile rule).
    return 8 * (4 // jnp.dtype(dtype).itemsize)


def _choose_tile(padded_dim: int, unit: int, max_tile: int) -> int:
    """Largest t with t % unit == 0, padded_dim % t == 0, t <= max_tile."""
    assert padded_dim % unit == 0
    if padded_dim <= max_tile:
        return padded_dim
    t = (max_tile // unit) * unit
    while t > unit:
        if padded_dim % t == 0:
            return t
        t -= unit
    return unit


# ---------------------------------------------------------------------------
# Kernels
# ---------------------------------------------------------------------------

def _resblock_kernel_fused(*refs, use_skip: bool):
    """Single K step: straight GEMM + epilogue, no accumulator scratch."""
    if use_skip:
        x_ref, w_ref, b_ref, xs_ref, o_ref = refs
    else:
        x_ref, w_ref, b_ref, o_ref = refs
    # x:(tm, K) @ w:(K, tn) -> (tm, tn); weight is pre-transposed K-major, so this is a
    # plain MXU matmul with no per-tile transpose.
    y = jnp.dot(x_ref[...], w_ref[...], preferred_element_type=jnp.float32)
    y = y + b_ref[...]                       # bias broadcast over batch rows
    y = jnp.maximum(y, 0.0)                  # ReLU
    if use_skip:                             # static: in_features == out_features
        y = y + xs_ref[...].astype(jnp.float32)
    o_ref[...] = y.astype(o_ref.dtype)


def _resblock_kernel_acc(*refs, use_skip: bool):
    """Multi K step: f32 accumulator with pl.when init/finalize."""
    if use_skip:
        x_ref, w_ref, b_ref, xs_ref, o_ref, acc_ref = refs
    else:
        x_ref, w_ref, b_ref, o_ref, acc_ref = refs

    k = pl.program_id(2)

    @pl.when(k == 0)
    def _():
        acc_ref[...] = jnp.zeros_like(acc_ref)

    acc_ref[...] += jnp.dot(x_ref[...], w_ref[...],
                            preferred_element_type=jnp.float32)

    @pl.when(k == pl.num_programs(2) - 1)
    def _():
        y = acc_ref[...] + b_ref[...]
        y = jnp.maximum(y, 0.0)
        if use_skip:
            y = y + xs_ref[...].astype(jnp.float32)
        o_ref[...] = y.astype(o_ref.dtype)


# ---------------------------------------------------------------------------
# Wrapper
# ---------------------------------------------------------------------------

def prepare_params(weight, bias, *, compute_dtype=None):
    """One-time parameter prep (hoisted out of the forward path).

    weight: (out_features, in_features)  -- native nn.Linear layout
    Returns (w_t, b_row, (in_features, out_features)) where
      w_t:   (Kp, Np) K-major, zero-padded, in compute dtype
      b_row: (1, Np)  f32 bias row
    """
    out_features, in_features = weight.shape
    dtype = jnp.dtype(compute_dtype) if compute_dtype is not None else jnp.dtype(weight.dtype)
    Kp = _round_up(in_features, 128)
    Np = _round_up(out_features, 128)

    w_t = jnp.asarray(weight).T              # (in, out): kernel never transposes a tile
    if (Kp, Np) != (in_features, out_features):
        w_t = jnp.pad(w_t, ((0, Kp - in_features), (0, Np - out_features)))
    w_t = w_t.astype(dtype)

    b_row = jnp.asarray(bias)
    if Np != out_features:
        b_row = jnp.pad(b_row, (0, Np - out_features))
    b_row = b_row.reshape(1, Np).astype(jnp.float32)
    return w_t, b_row, (in_features, out_features)


def residual_block_prepared(x, w_t, b_row, in_features, out_features, *,
                            compute_dtype=None, tm_max: int = 512,
                            tn_max: int = 512, tk_max: int = 2048):
    """Forward pass using pre-padded / pre-transposed params from `prepare_params`."""
    B, k_x = x.shape
    assert k_x == in_features
    Kp, Np = w_t.shape
    dtype = jnp.dtype(compute_dtype) if compute_dtype is not None else jnp.dtype(x.dtype)
    assert jnp.dtype(w_t.dtype) == dtype, "weight compute dtype must match compute_dtype"
    use_skip = in_features == out_features
    out_dtype = jnp.asarray(x).dtype

    sub = _sublane_unit(dtype)
    Bp = _round_up(B, sub)
    tm = _choose_tile(Bp, sub, tm_max)
    tn = _choose_tile(Np, 128, tn_max)
    tk = _choose_tile(Kp, 128, tk_max)

    # v7x megacore: make sure the parallel (M, N) grid has >= 2 steps when possible,
    # otherwise one of the two TensorCores idles.
    if (Bp // tm) * (Np // tn) == 1:
        if Np // 128 >= 2:
            tn = _choose_tile(Np, 128, max(128, Np // 2))
        elif Bp // sub >= 2:
            tm = _choose_tile(Bp, sub, max(sub, Bp // 2))

    multi_k = (Kp // tk) > 1

    # Per-call activation padding (zero-padding is exact: padded K cols contribute 0,
    # padded N cols give ReLU(0)+0=0 and are sliced off).
    xp = jnp.asarray(x)
    if Bp != B or Kp != in_features:
        xp = jnp.pad(xp, ((0, Bp - B), (0, Kp - in_features)))
    if xp.dtype != dtype:
        xp = xp.astype(dtype)

    if multi_k:
        grid = (Bp // tm, Np // tn, Kp // tk)
        in_specs = [
            pl.BlockSpec((tm, tk), lambda i, j, k: (i, k)),   # x
            pl.BlockSpec((tk, tn), lambda i, j, k: (k, j)),   # weight (K-major)
            pl.BlockSpec((1, tn), lambda i, j, k: (0, j)),    # bias
        ]
        inputs = [xp, w_t, b_row]
        if use_skip:
            # k-invariant block index -> residual tile stays resident across the K loop.
            in_specs.append(pl.BlockSpec((tm, tn), lambda i, j, k: (i, j)))
            inputs.append(xp)
        out_spec = pl.BlockSpec((tm, tn), lambda i, j, k: (i, j))
        scratch = [pltpu.VMEM((tm, tn), jnp.float32)]
        kernel = functools.partial(_resblock_kernel_acc, use_skip=use_skip)
        dims = ("parallel", "parallel", "arbitrary")
        tk_eff = tk
    else:
        grid = (Bp // tm, Np // tn)
        in_specs = [
            pl.BlockSpec((tm, Kp), lambda i, j: (i, 0)),      # x (full K in one tile)
            pl.BlockSpec((Kp, tn), lambda i, j: (0, j)),      # weight (K-major)
            pl.BlockSpec((1, tn), lambda i, j: (0, j)),       # bias
        ]
        inputs = [xp, w_t, b_row]
        if use_skip:
            in_specs.append(pl.BlockSpec((tm, tn), lambda i, j: (i, j)))
            inputs.append(xp)
        out_spec = pl.BlockSpec((tm, tn), lambda i, j: (i, j))
        scratch = []
        kernel = functools.partial(_resblock_kernel_fused, use_skip=use_skip)
        dims = ("parallel", "parallel")
        tk_eff = Kp

    # vmem_limit sized from the real double-buffered footprint (floor 16 MiB, cap 64 MiB
    # so it also fits v7x's per-TC physical VMEM with headroom).
    in_item = dtype.itemsize
    out_item = jnp.dtype(out_dtype).itemsize
    vmem_bytes = 2 * (tm * tk_eff + tk_eff * tn) * in_item     # x, weight (double-buffered)
    vmem_bytes += 2 * 8 * tn * 4                               # bias row (sublane-padded)
    vmem_bytes += 2 * tm * tn * out_item                       # output
    if use_skip:
        vmem_bytes += 2 * tm * tn * in_item                    # residual tile
    if multi_k:
        vmem_bytes += tm * tn * 4                              # accumulator scratch
    vmem_limit = min(max(int(vmem_bytes * 1.5), 16 * 1024 * 1024), 64 * 1024 * 1024)

    out = pl.pallas_call(
        kernel,
        out_shape=jax.ShapeDtypeStruct((Bp, Np), out_dtype),
        grid_spec=pltpu.PrefetchScalarGridSpec(
            num_scalar_prefetch=0,
            grid=grid,
            in_specs=in_specs,
            out_specs=out_spec,
            scratch_shapes=scratch,
        ),
        compiler_params=pltpu.CompilerParams(
            dimension_semantics=dims,
            vmem_limit_bytes=vmem_limit,
        ),
    )(*inputs)

    if Bp != B or Np != out_features:
        out = out[:B, :out_features]
    return out


def residual_block(x, weight, bias, *, compute_dtype=None, tm_max: int = 512,
                   tn_max: int = 512, tk_max: int = 2048):
    """Convenience wrapper: prepares params per call.  For repeated forward passes,
    call `prepare_params` once and reuse `residual_block_prepared`."""
    w_t, b_row, shape_info = prepare_params(weight, bias, compute_dtype=compute_dtype)
    return residual_block_prepared(x, w_t, b_row, *shape_info,
                                   compute_dtype=compute_dtype,
                                   tm_max=tm_max, tn_max=tn_max, tk_max=tk_max)


def _reference(x, weight, bias):
    out = jnp.maximum(x @ weight.T + bias, 0.0)
    if x.shape[-1] == weight.shape[0]:
        out = out + x
    return out


if __name__ == "__main__":
    key = jax.random.PRNGKey(0)
    kx, kw, kb, kw2, kb2, kx3, kw3, kb3 = jax.random.split(key, 8)

    # --- small shapes matching the module (skip connection active), single-K fused path ---
    B, in_features, out_features = 8, 32, 32
    bound = 1.0 / jnp.sqrt(jnp.float32(in_features))
    x = jax.random.normal(kx, (B, in_features), dtype=jnp.float32)
    weight = jax.random.uniform(kw, (out_features, in_features),
                                minval=-bound, maxval=bound, dtype=jnp.float32)
    bias = jax.random.uniform(kb, (out_features,),
                              minval=-bound, maxval=bound, dtype=jnp.float32)

    out = jax.block_until_ready(residual_block(x, weight, bias))
    ref = _reference(x, weight, bias)
    assert jnp.allclose(out, ref, atol=1e-5, rtol=1e-5), "skip-path mismatch"

    # --- no-skip path (in_features != out_features) ---
    out_features2 = 48
    weight2 = jax.random.uniform(kw2, (out_features2, in_features),
                                 minval=-bound, maxval=bound, dtype=jnp.float32)
    bias2 = jax.random.uniform(kb2, (out_features2,),
                               minval=-bound, maxval=bound, dtype=jnp.float32)
    out2 = jax.block_until_ready(residual_block(x, weight2, bias2))
    ref2 = _reference(x, weight2, bias2)
    assert jnp.allclose(out2, ref2, atol=1e-5, rtol=1e-5), "no-skip-path mismatch"

    # --- 640 features: pads to 640 (not 1024), multi-N-tile, hoisted param prep ---
    B3, f3 = 16, 640
    bound3 = 1.0 / jnp.sqrt(jnp.float32(f3))
    x3 = jax.random.normal(kx3, (B3, f3), dtype=jnp.float32)
    weight3 = jax.random.uniform(kw3, (f3, f3),
                                 minval=-bound3, maxval=bound3, dtype=jnp.float32)
    bias3 = jax.random.uniform(kb3, (f3,),
                               minval=-bound3, maxval=bound3, dtype=jnp.float32)
    w3_t, b3_row, shape3 = prepare_params(weight3, bias3)          # padded/transposed once
    out3 = jax.block_until_ready(
        residual_block_prepared(x3, w3_t, b3_row, *shape3))
    ref3 = _reference(x3, weight3, bias3)
    assert jnp.allclose(out3, ref3, atol=1e-4, rtol=1e-5), "multi-tile mismatch"

    # --- force the multi-K accumulator path (tk_max small) ---
    out3b = jax.block_until_ready(
        residual_block_prepared(x3, w3_t, b3_row, *shape3, tk_max=256))
    assert jnp.allclose(out3b, ref3, atol=1e-4, rtol=1e-5), "multi-K accumulator mismatch"

    # --- optional bf16 compute path (f32 accumulation; 16-sublane padding) ---
    out_bf16 = jax.block_until_ready(
        residual_block(x, weight, bias, compute_dtype=jnp.bfloat16))
    assert jnp.allclose(out_bf16, ref, atol=3e-2, rtol=3e-2), "bf16-path mismatch"

    print("KERNEL_OK")
</pallas_src>

<mosaic_0001>
module attributes {stable_mosaic.version = 11 : i64} {
  func.func @_resblock_kernel_fused(%arg0: i32, %arg1: i32, %arg2: memref<8x128xf32, #tpu.memory_space<vmem>>, %arg3: memref<128x128xf32, #tpu.memory_space<vmem>>, %arg4: memref<1x128xf32, #tpu.memory_space<vmem>>, %arg5: memref<8x128xf32, #tpu.memory_space<vmem>>, %arg6: memref<8x128xf32, #tpu.memory_space<vmem>>) attributes {dimension_semantics = [#tpu.dimension_semantics<parallel>, #tpu.dimension_semantics<parallel>], iteration_bounds = array<i64: 1, 1>, scalar_prefetch = 0 : i64, scratch_operands = 0 : i64, tpu.core_type = #tpu.core_type<tc>, window_params = [{transform_indices = @transform_0, window_bounds = array<i64: 8, 128>}, {transform_indices = @transform_1, window_bounds = array<i64: 128, 128>}, {transform_indices = @transform_2, window_bounds = array<i64: 1, 128>}, {transform_indices = @transform_3, window_bounds = array<i64: 8, 128>}, {transform_indices = @transform_4, window_bounds = array<i64: 8, 128>}]} {
    %c0 = arith.constant 0 : index
    %c0_0 = arith.constant 0 : index
    %0 = vector.load %arg2[%c0, %c0_0] : memref<8x128xf32, #tpu.memory_space<vmem>>, vector<8x128xf32>
    %c0_1 = arith.constant 0 : index
    %c0_2 = arith.constant 0 : index
    %1 = vector.load %arg3[%c0_1, %c0_2] : memref<128x128xf32, #tpu.memory_space<vmem>>, vector<128x128xf32>
    %cst = arith.constant dense<0.000000e+00> : vector<8x128xf32>
    %2 = tpu.matmul %0, %1, %cst {dimension_numbers = #tpu.dot_dimension_numbers<[1], [0], [0], [1], [0, 0, 1, 1], [], []>} : vector<8x128xf32>, vector<128x128xf32>, vector<8x128xf32> -> vector<8x128xf32>
    %c0_3 = arith.constant 0 : index
    %c0_4 = arith.constant 0 : index
    %3 = vector.load %arg4[%c0_3, %c0_4] : memref<1x128xf32, #tpu.memory_space<vmem>>, vector<1x128xf32>
    %4 = vector.broadcast %3 : vector<1x128xf32> to vector<8x128xf32>
    %5 = arith.addf %2, %4 : vector<8x128xf32>
    %cst_5 = arith.constant 0.000000e+00 : f32
    %6 = vector.broadcast %cst_5 : f32 to vector<8x128xf32>
    %7 = arith.maximumf %5, %6 : vector<8x128xf32>
    %c0_6 = arith.constant 0 : index
    %c0_7 = arith.constant 0 : index
    %8 = vector.load %arg5[%c0_6, %c0_7] : memref<8x128xf32, #tpu.memory_space<vmem>>, vector<8x128xf32>
    %9 = arith.addf %7, %8 : vector<8x128xf32>
    %c0_8 = arith.constant 0 : index
    %c0_9 = arith.constant 0 : index
    %10 = vector.load %arg6[%c0_8, %c0_9] : memref<8x128xf32, #tpu.memory_space<vmem>>, vector<8x128xf32>
    tpu.vector_store %arg6[%c0_8, %c0_9], %9 {strides = array<i32>} : memref<8x128xf32, #tpu.memory_space<vmem>>, vector<8x128xf32>,
    return
  }
  func.func @transform_0(%arg0: i32, %arg1: i32) -> (i32, i32) {
    %c0_i32 = arith.constant 0 : i32
    %c0_i32_0 = arith.constant 0 : i32
    return %arg0, %c0_i32 : i32, i32
  }
  func.func @transform_1(%arg0: i32, %arg1: i32) -> (i32, i32) {
    %c0_i32 = arith.constant 0 : i32
    %c0_i32_0 = arith.constant 0 : i32
    return %c0_i32, %arg1 : i32, i32
  }
  func.func @transform_2(%arg0: i32, %arg1: i32) -> (i32, i32) {
    %c0_i32 = arith.constant 0 : i32
    %c0_i32_0 = arith.constant 0 : i32
    return %c0_i32, %arg1 : i32, i32
  }
  func.func @transform_3(%arg0: i32, %arg1: i32) -> (i32, i32) {
    %c0_i32 = arith.constant 0 : i32
    return %arg0, %arg1 : i32, i32
  }
  func.func @transform_4(%arg0: i32, %arg1: i32) -> (i32, i32) {
    %c0_i32 = arith.constant 0 : i32
    return %arg0, %arg1 : i32, i32
  }
}

</mosaic_0001>

<bundles_post_ra>
// kernel: tpu_custom_call.1
= control target key start
LH: loop header
LB: loop body
LE: loop exit
PB: predicated region body
PF: predicated region fallthrough
CT: control target
= control target key end

     0   :  { %9 = vsyncpa [#allocation3], 0  ;;  %s279_s0 = inlined_call_operand.hbm [shape: f32[8,128], index: 0, kind: input, shape index: {}]   ;;  %s280_s1 = inlined_call_operand.hbm [shape: f32[128,128], index: 1, kind: input, shape index: {}]   ;;  %s281_s2 = inlined_call_operand.vmem [shape: f32[1,128], index: 2, kind: input, shape index: {}]   ;;  %s282_s3 = inlined_call_operand.hbm [shape: f32[8,128], index: 3, kind: input, shape index: {}]   ;;  %s283_s4 = inlined_call_operand.hbm [shape: f32[8,128], index: 4, kind: output, shape index: {}]  }
   0x1   :  { %10 = vsyncpa [#allocation6], 0  ;;  %s27_s17 = sshll.u32 %s280_s1, 4  ;;  %s28_s17 = int_to_ptr.hbm [resolvable:$true] %s27_s17 }
   0x2   :  { %11 = vsyncpa [#allocation4], 0  ;;  %s233_s18 = smov [#allocation5]   ;;  %s17_s22 = sshll.u32 %s279_s0, 4  ;;  %s18_s22 = int_to_ptr.hbm [resolvable:$true] %s17_s22 }
   0x3   :  { %s29_s19 = sshll.u32 %s233_s18, 4  ;;  %s234_s23 = smov 128   ;;  %s30_s19 = int_to_ptr.vmem [resolvable:$true] %s29_s19 }
   0x4   :  { %s235_s24 = smov 8   ;;  %s236_s25 = smov [#allocation2]  }
   0x5   :  { %35 = dma.hbm_to_vmem [thread:$0]  %s28_s17, 2048, %s30_s19, [#allocation6], %s234_s23, %s234_s23, %s235_s24  }
   0x6   :  { %s19_s26 = sshll.u32 %s236_s25, 4  ;;  %s43_s29 = sshll.u32 %s282_s3, 4  ;;  %s20_s26 = int_to_ptr.vmem [resolvable:$true] %s19_s26  ;;  %s44_s29 = int_to_ptr.hbm [resolvable:$true] %s43_s29 }
   0x7   :  { %22 = dma.hbm_to_vmem [thread:$0]  %s18_s22, 128, %s20_s26, [#allocation3]  }
   0x8   :  { %s237_s1 = smov [#allocation7]  }
   0x9   :  { %s45_s30 = sshll.u32 %s237_s1, 4  ;;  %s46_s30 = int_to_ptr.vmem [resolvable:$true] %s45_s30 }
   0xa   :  { %48 = dma.hbm_to_vmem [thread:$0]  %s44_s29, 128, %s46_s30, [#allocation6]  }
   0xb   :  { %227 = dma.done.wait [#allocation3], 128  }
   0xc   :  { %228 = vsyncadd [#allocation3], 4294967168 }
   0xd   :  { %229 = dma.done.wait [#allocation6], 2176  }
   0xe   :  { %230 = vsyncadd [#allocation6], 4294965120  ;;  %v77_v0 = vld [vmem:[#allocation5 + $0x78] sm:$0xff]  ;;  %v76_v1 = vld [vmem:[#allocation5 + $0x70] sm:$0xff]  ;;  %s238_s5 = smov [#allocation8]   ;;  %s113_s9 = sshll.u32 %s283_s4, 4  ;;  %s114_s9 = int_to_ptr.hbm [resolvable:$true] %s113_s9 }
   0xf   :  { %82 = vmatpush.msra.mxu0 %v77_v0  ;;  %v75_v2 = vld [vmem:[#allocation5 + $0x68] sm:$0xff]  ;;  %v74_v3 = vld [vmem:[#allocation5 + $0x60] sm:$0xff]  ;;  %v73_v4 = vld [vmem:[#allocation5 + $0x58] sm:$0xff]  ;;  %s111_s6 = sshll.u32 %s238_s5, 4  ;;  %s112_s6 = int_to_ptr.vmem [resolvable:$true] %s111_s6 }
  0x10   :  { %v72_v5 = vld [vmem:[#allocation5 + $0x50] sm:$0xff]  ;;  %v71_v6 = vld [vmem:[#allocation5 + $0x48] sm:$0xff]  ;;  %v70_v7 = vld [vmem:[#allocation5 + $0x40] sm:$0xff] }
  0x11   :  { %83 = vmatpush.msra.mxu0 %v76_v1  ;;  %v69_v8 = vld [vmem:[#allocation5 + $0x38] sm:$0xff]  ;;  %v68_v9 = vld [vmem:[#allocation5 + $0x30] sm:$0xff]  ;;  %v67_v10 = vld [vmem:[#allocation5 + $0x28] sm:$0xff] }
  0x12   :  { %v66_v11 = vld [vmem:[#allocation5 + $0x20] sm:$0xff]  ;;  %v65_v12 = vld [vmem:[#allocation5 + $0x18] sm:$0xff]  ;;  %v64_v13 = vld [vmem:[#allocation5 + $0x10] sm:$0xff] }
  0x13   :  { %84 = vmatpush.msra.mxu0 %v75_v2  ;;  %v63_v14 = vld [vmem:[#allocation5 + $0x8] sm:$0xff]  ;;  %v62_v15 = vld [vmem:[#allocation5] sm:$0xff]  ;;  %v61_v16 = vld [vmem:[#allocation2] sm:$0xff] }
  0x14   :  { %v130_v17 = vld [vmem:[%s281_s2] ss:$0 sm:$0xff]  ;;  %v103_v20 = vld [vmem:[#allocation7] sm:$0xff] }
  0x15   :  { %85 = vmatpush.msra.mxu0 %v74_v3 }
  0x17   :  { %86 = vmatpush.msra.mxu0 %v73_v4 }
  0x19   :  { %87 = vmatpush.msra.mxu0 %v72_v5 }
  0x1b   :  { %88 = vmatpush.msra.mxu0 %v71_v6 }
  0x1d   :  { %89 = vmatpush.msra.mxu0 %v70_v7 }
  0x1f   :  { %90 = vmatpush.msra.mxu0 %v69_v8 }
  0x21   :  { %91 = vmatpush.msra.mxu0 %v68_v9 }
  0x23   :  { %92 = vmatpush.msra.mxu0 %v67_v10 }
  0x25   :  { %93 = vmatpush.msra.mxu0 %v66_v11 }
  0x27   :  { %94 = vmatpush.msra.mxu0 %v65_v12 }
  0x29   :  { %95 = vmatpush.msra.mxu0 %v64_v13 }
  0x2b   :  { %96 = vmatpush.msra.mxu0 %v63_v14 }
  0x2d   :  { %97 = vmatpush.msra.mxu0 %v62_v15 }
  0x2e   :  { %98 = vmatmul.f32.vlgmr.msra.gmra.mxu0 %v61_v16 }
  0xab   :  { %v99_v18 = vpop.f32.mrf.mxu0 }
  0xac   :  { %v100_v19 = vadd.f32 %v130_v17, %v99_v18 }
  0xae   :  { %v102_v21 = vmax.f32 %v100_v19, 0.0 }
  0xb0   :  { %v104_v22 = vadd.f32 %v103_v20, %v102_v21 }
  0xb2   :  { %105 = vst [vmem:[#allocation8] sm:$0xff] %v104_v22 }
  0xb3   :  { %116 = dma.vmem_to_hbm [thread:$0]  %s112_s6, 128, %s114_s9, [#allocation4]  }
  0xb4   :  { %231 = dma.done.wait [#allocation4], 128  }
  0xb5   :  { %232 = vsyncadd [#allocation4], 4294967168 }
  0xb6   :  { %121 = vsyncpa [#allocation3], 1 }
  0xb7   :  { %122 = vsyncpa [#allocation6], 1 }
  0xb8   :  { %123 = vsyncpa [#allocation4], 1 }

</bundles_post_ra>
